<compile_context>
chip_gen: v7x
topology: tpu7x:2x2x1
jax: 0.10.0
libtpu: 0.0.40
codegen_flags: <defaults>
</compile_context>

<pallas_src>
import functools

import jax
import jax.numpy as jnp
import numpy as np
from jax import lax
from jax.experimental import pallas as pl
from jax.experimental.pallas import tpu as pltpu


def _loss_kernel(scal_ref, pts_ref, logits_ref, out_ref, *, n, alpha, beta,
                 inv_w, inv_h, ratio_non_background, bg_class_idx):
    f32 = jnp.float32
    n_pad = pts_ref.shape[1]

    px = pts_ref[0:1, :]                          # (1, n_pad) raw pixel x
    py = pts_ref[1:2, :]                          # (1, n_pad) raw pixel y
    logits = logits_ref[...]                      # (C, n_pad), classes on sublanes

    lane = lax.broadcasted_iota(jnp.int32, (1, n_pad), 1)
    valid = lane < n                              # (1, n_pad) real (non-padded) lanes

    # --- corner constants from SMEM scalars, splat onto (4, n_pad) tiles -------
    row4i = lax.broadcasted_iota(jnp.int32, (4, n_pad), 0)
    row4 = row4i.astype(f32)

    def corner_bcast(base):
        c = jnp.zeros((4, n_pad), f32)
        for j in range(4):                        # 4 cheap VPU selects per constant
            c = jnp.where(row4i == j, scal_ref[base + j], c)
        return c

    tx = corner_bcast(0)                          # (4, n_pad) corner x (pixels)
    ty = corner_bcast(4)                          # (4, n_pad) corner y (pixels)
    thr2 = corner_bcast(8)                        # (4, n_pad) squared-dist threshold

    # --- squared distances & positive assignment (first corner wins ties) ------
    dx = px - tx
    dy = py - ty
    d2 = dx * dx + dy * dy                        # (4, n_pad)
    pos = (d2 <= thr2) & valid
    inf = f32(jnp.inf)
    masked = jnp.where(pos, d2, inf)
    min_d = jnp.min(masked, axis=0, keepdims=True)              # (1, n_pad)
    cand = jnp.where(pos & (masked == min_d), row4, f32(4.0))
    label = jnp.min(cand, axis=0, keepdims=True)                 # (1, n_pad); 4 = bg
    member_f = (row4 == label).astype(f32)                       # (4, n_pad) one-hot
    bg = (label >= f32(4.0)) & valid                             # (1, n_pad)
    bg_f = bg.astype(f32)

    # --- location MSE numerators (normalized, clipped coords) ------------------
    pxn = jnp.clip(px * inv_w, 0.0, 1.0)
    pyn = jnp.clip(py * inv_h, 0.0, 1.0)
    txn = jnp.clip(tx * inv_w, 0.0, 1.0)
    tyn = jnp.clip(ty * inv_h, 0.0, 1.0)
    ddx = pxn - txn
    ddy = pyn - tyn
    sq = ddx * ddx + ddy * ddy                                   # (4, n_pad)

    # --- classification CE numerators (log-sum-exp over classes) ---------------
    mmax = jnp.max(logits, axis=0, keepdims=True)                # (1, n_pad)
    lse = mmax + jnp.log(jnp.sum(jnp.exp(logits - mmax), axis=0, keepdims=True))
    nll_pos = lse - logits[0:4, :]                               # (4, n_pad)
    nll_bg = lse - logits[bg_class_idx:bg_class_idx + 1, :]      # (1, n_pad)

    # --- fused cross-lane reductions (3 instead of 7) ---------------------------
    redA = jnp.sum(jnp.concatenate([member_f, sq * member_f], axis=0),
                   axis=1, keepdims=True)                        # (8, 1)
    redB = jnp.sum(jnp.concatenate([nll_pos * member_f, bg_f], axis=0),
                   axis=1, keepdims=True)                        # (5, 1)
    cnt = redA[0:4, :]                                           # positives per corner
    ssum = redA[4:8, :]                                          # MSE numerators
    ce_sum = redB[0:4, :]                                        # CE numerators
    bg_cnt = redB[4:5, :]                                        # (1, 1)

    has = cnt > 0.0
    mse = jnp.where(has, ssum / jnp.maximum(2.0 * cnt, 1.0), 0.0)
    ce = jnp.where(has, ce_sum / jnp.maximum(cnt, 1.0), 0.0)
    loc_loss = jnp.sum(mse, axis=0, keepdims=True)               # (1, 1)
    cls_loss = jnp.sum(ce, axis=0, keepdims=True)                # (1, 1)
    non_bg_cnt = jnp.sum(cnt, axis=0, keepdims=True)             # (1, 1)

    # --- background CE with capped sample count --------------------------------
    # TODO(synk): torch uses torch.multinomial (random) to subsample background
    # points; here the first max_bg background lanes are taken deterministically.
    max_bg = jnp.floor(non_bg_cnt * f32(ratio_non_background))

    # Inclusive prefix count ("rank") of background lanes via ONE MXU matmul:
    # tri[r, c] = 1 iff r <= c (ones on/above the diagonal), so
    # rank[c] = sum_{r<=c} bg[r].  bf16 0/1 inputs + f32 accumulation => exact.
    ri = lax.broadcasted_iota(jnp.int32, (n_pad, n_pad), 0)
    ci = lax.broadcasted_iota(jnp.int32, (n_pad, n_pad), 1)
    tri = (ri <= ci).astype(jnp.bfloat16)                        # (n_pad, n_pad)
    rank = jnp.dot(bg_f.astype(jnp.bfloat16), tri,
                   preferred_element_type=jnp.float32)           # (1, n_pad)

    use_sub = bg_cnt > max_bg                                    # (1, 1)
    sel_f = (bg & ((rank <= max_bg) | jnp.logical_not(use_sub))).astype(f32)
    redC = jnp.sum(jnp.concatenate([sel_f, nll_bg * sel_f], axis=0),
                   axis=1, keepdims=True)                        # (2, 1)
    sel_cnt = redC[0:1, :]
    ce_bg_num = redC[1:2, :]
    cls_loss = cls_loss + jnp.where(sel_cnt > 0.0,
                                    ce_bg_num / jnp.maximum(sel_cnt, 1.0), 0.0)

    total = f32(alpha) * loc_loss + f32(beta) * cls_loss

    # single lane-dense (1, 128) output: lane 0 = loc, lane 1 = cls, lane 2 = total
    out_lane = lax.broadcasted_iota(jnp.int32, (1, 128), 1)
    out_ref[...] = (jnp.where(out_lane == 0, loc_loss, 0.0)
                    + jnp.where(out_lane == 1, cls_loss, 0.0)
                    + jnp.where(out_lane == 2, total, 0.0))


@functools.partial(jax.jit,
                   static_argnames=("image_size", "alpha", "beta",
                                    "distance_threshold_ratio",
                                    "ratio_non_background"))
def multi_task_loss(locations_pred, classifications_pred, locations_true,
                    image_size, *, alpha=1.0, beta=1.0,
                    distance_threshold_ratio=0.1, ratio_non_background=3.0):
    """locations_pred (1,n,2), classifications_pred (1,n,C), locations_true (1,8)."""
    assert locations_pred.shape[0] == 1 and locations_true.shape == (1, 8)
    pred = locations_pred[0].astype(jnp.float32)                 # (n, 2)
    logits = classifications_pred[0].astype(jnp.float32)         # (n, C)
    n = pred.shape[0]
    C = logits.shape[1]
    assert C > 4, "need at least 5 classes (class 4 = background)"
    k = int(distance_threshold_ratio * n)
    assert k >= 1, "need at least one positive per ground-truth point"
    height, width = image_size
    true = locations_true.reshape(4, 2).astype(jnp.float32)      # (4, 2)

    # k-th smallest squared distance per corner.  Written with the exact same
    # op structure the kernel uses (sub, mul, mul, add — no FMA on the TPU VPU)
    # so both sides see bit-identical d2; the 1e-6 relative bump is insurance
    # against any residual ulp-level recompute difference at the threshold point.
    dxw = pred[:, None, 0] - true[None, :, 0]                    # (n, 4)
    dyw = pred[:, None, 1] - true[None, :, 1]
    d2 = dxw * dxw + dyw * dyw                                   # (n, 4)
    thr2 = -lax.top_k(-d2.T, k)[0][:, k - 1]                     # (4,)
    thr2 = thr2 * (1.0 + 1e-6)

    scal = jnp.concatenate([true[:, 0], true[:, 1], thr2])       # (12,) SMEM scalars

    n_pad = ((n + 127) // 128) * 128
    pad = n_pad - n
    pts = jnp.pad(pred.T, ((0, 0), (0, pad)))                    # (2, n_pad)
    logT = jnp.pad(logits.T, ((0, 0), (0, pad)))                 # (C, n_pad)

    kernel = functools.partial(
        _loss_kernel, n=n, alpha=float(alpha), beta=float(beta),
        inv_w=1.0 / float(width), inv_h=1.0 / float(height),
        ratio_non_background=float(ratio_non_background), bg_class_idx=4)

    smem = pl.BlockSpec(memory_space=pltpu.MemorySpace.SMEM)
    vmem = pl.BlockSpec(memory_space=pltpu.MemorySpace.VMEM)
    # TODO(synk): if this loss is ever batched (B > 1), add a batch grid axis
    # with dimension_semantics=("parallel",) so v7x's two TensorCores split it;
    # for very large n, tile the lane axis with per-block partial sums
    # (marked "arbitrary") and a two-pass background-rank instead of the
    # single (n_pad, n_pad) triangular matmul.
    out = pl.pallas_call(
        kernel,
        out_shape=jax.ShapeDtypeStruct((1, 128), jnp.float32),
        in_specs=[smem, vmem, vmem],
        out_specs=vmem,
    )(scal, pts, logT)
    return out[0, 2], out[0, 0], out[0, 1]        # total, loc_loss, cls_loss


def reference_loss(locations_pred, classifications_pred, locations_true, image_size,
                   alpha=1.0, beta=1.0, distance_threshold_ratio=0.1,
                   ratio_non_background=3.0):
    """Pure numpy re-implementation of the torch forward (deterministic bg pick)."""
    pred = np.asarray(locations_pred[0], dtype=np.float32)
    cls = np.asarray(classifications_pred[0], dtype=np.float32)
    true = np.asarray(locations_true, dtype=np.float32).reshape(4, 2)
    n = pred.shape[0]
    k = int(distance_threshold_ratio * n)
    d = np.sqrt(((pred[:, None, :] - true[None, :, :]) ** 2).sum(-1)).astype(np.float32)
    pos_masks = [d[:, j] <= np.sort(d[:, j])[k - 1] for j in range(4)]
    labels = -np.ones(n, dtype=np.int32)
    min_d = np.full(n, np.inf, dtype=np.float32)
    for j in range(4):
        for i in range(n):
            if pos_masks[j][i] and d[i, j] < min_d[i]:
                min_d[i] = d[i, j]
                labels[i] = j
    height, width = image_size
    size = np.array([width, height], dtype=np.float32)
    pred_n = np.clip(pred / size, 0.0, 1.0)
    true_n = np.clip(true / size, 0.0, 1.0)
    mmax = cls.max(1, keepdims=True)
    lse = (np.log(np.exp(cls - mmax).sum(1, keepdims=True)) + mmax)[:, 0]
    loc_loss = 0.0
    cls_loss = 0.0
    for j in range(4):
        idx = np.where(labels == j)[0]
        if idx.size:
            diff = pred_n[idx] - true_n[j][None, :]
            loc_loss += float((diff ** 2).mean())
            cls_loss += float((lse[idx] - cls[idx, j]).mean())
    bg_idx = np.where(labels == -1)[0]
    non_bg = int((labels != -1).sum())
    max_bg = int(non_bg * ratio_non_background)
    if bg_idx.size > max_bg:
        bg_idx = bg_idx[:max_bg]   # deterministic stand-in for torch.multinomial
    if bg_idx.size:
        cls_loss += float((lse[bg_idx] - cls[bg_idx, 4]).mean())
    return alpha * loc_loss + beta * cls_loss


if __name__ == "__main__":
    key = jax.random.PRNGKey(0)
    k1, k2, k3 = jax.random.split(key, 3)
    n, num_classes = 64, 5
    image_size = (64, 64)   # (height, width)

    locations_pred = jax.random.uniform(k1, (1, n, 2), jnp.float32, 0.0, 64.0)
    locations_true = jax.random.uniform(k2, (1, 8), jnp.float32, 8.0, 56.0)
    classifications_pred = jax.random.normal(k3, (1, n, num_classes), jnp.float32)

    total, loc_l, cls_l = multi_task_loss(
        locations_pred, classifications_pred, locations_true,
        image_size=image_size)
    total = jax.block_until_ready(total)

    ref_total = reference_loss(
        np.asarray(locations_pred), np.asarray(classifications_pred),
        np.asarray(locations_true), image_size)

    np.testing.assert_allclose(np.asarray(total), ref_total, rtol=2e-3, atol=2e-3)
    print("KERNEL_OK")
</pallas_src>

<mosaic_0001>
module attributes {stable_mosaic.version = 11 : i64} {
  func.func @_loss_kernel(%arg0: memref<12xf32, #tpu.memory_space<smem>>, %arg1: memref<2x128xf32, #tpu.memory_space<vmem>>, %arg2: memref<5x128xf32, #tpu.memory_space<vmem>>, %arg3: memref<1x128xf32, #tpu.memory_space<vmem>>) attributes {dimension_semantics = [], scalar_prefetch = 0 : i64, scratch_operands = 0 : i64, tpu.core_type = #tpu.core_type<tc>} {
    %c0 = arith.constant 0 : index
    %c0_0 = arith.constant 0 : index
    %0 = vector.load %arg1[%c0, %c0_0] : memref<2x128xf32, #tpu.memory_space<vmem>>, vector<1x128xf32>
    %c1 = arith.constant 1 : index
    %c0_1 = arith.constant 0 : index
    %1 = vector.load %arg1[%c1, %c0_1] : memref<2x128xf32, #tpu.memory_space<vmem>>, vector<1x128xf32>
    %c0_2 = arith.constant 0 : index
    %c0_3 = arith.constant 0 : index
    %2 = vector.load %arg2[%c0_2, %c0_3] : memref<5x128xf32, #tpu.memory_space<vmem>>, vector<5x128xf32>
    %3 = tpu.iota {dimensions = array<i32: 1>} : vector<1x128xi32>
    %c64_i32 = arith.constant 64 : i32
    %4 = vector.broadcast %c64_i32 : i32 to vector<1x128xi32>
    %5 = arith.cmpi slt, %3, %4 : vector<1x128xi32>
    %6 = tpu.iota {dimensions = array<i32: 0>} : vector<4x128xi32>
    %7 = arith.sitofp %6 : vector<4x128xi32> to vector<4x128xf32>
    %cst = arith.constant 0.000000e+00 : f32
    %8 = vector.broadcast %cst : f32 to vector<4x128xf32>
    %c0_i32 = arith.constant 0 : i32
    %9 = vector.broadcast %c0_i32 : i32 to vector<4x128xi32>
    %10 = arith.cmpi eq, %6, %9 : vector<4x128xi32>
    %c0_4 = arith.constant 0 : index
    %11 = memref.load %arg0[%c0_4] : memref<12xf32, #tpu.memory_space<smem>>
    %12 = vector.broadcast %11 : f32 to vector<4x128xf32>
    %13 = arith.select %10, %12, %8 : vector<4x128xi1>, vector<4x128xf32>
    %c1_i32 = arith.constant 1 : i32
    %14 = vector.broadcast %c1_i32 : i32 to vector<4x128xi32>
    %15 = arith.cmpi eq, %6, %14 : vector<4x128xi32>
    %c1_5 = arith.constant 1 : index
    %16 = memref.load %arg0[%c1_5] : memref<12xf32, #tpu.memory_space<smem>>
    %17 = vector.broadcast %16 : f32 to vector<4x128xf32>
    %18 = arith.select %15, %17, %13 : vector<4x128xi1>, vector<4x128xf32>
    %c2_i32 = arith.constant 2 : i32
    %19 = vector.broadcast %c2_i32 : i32 to vector<4x128xi32>
    %20 = arith.cmpi eq, %6, %19 : vector<4x128xi32>
    %c2 = arith.constant 2 : index
    %21 = memref.load %arg0[%c2] : memref<12xf32, #tpu.memory_space<smem>>
    %22 = vector.broadcast %21 : f32 to vector<4x128xf32>
    %23 = arith.select %20, %22, %18 : vector<4x128xi1>, vector<4x128xf32>
    %c3_i32 = arith.constant 3 : i32
    %24 = vector.broadcast %c3_i32 : i32 to vector<4x128xi32>
    %25 = arith.cmpi eq, %6, %24 : vector<4x128xi32>
    %c3 = arith.constant 3 : index
    %26 = memref.load %arg0[%c3] : memref<12xf32, #tpu.memory_space<smem>>
    %27 = vector.broadcast %26 : f32 to vector<4x128xf32>
    %28 = arith.select %25, %27, %23 : vector<4x128xi1>, vector<4x128xf32>
    %cst_6 = arith.constant 0.000000e+00 : f32
    %29 = vector.broadcast %cst_6 : f32 to vector<4x128xf32>
    %c0_i32_7 = arith.constant 0 : i32
    %30 = vector.broadcast %c0_i32_7 : i32 to vector<4x128xi32>
    %31 = arith.cmpi eq, %6, %30 : vector<4x128xi32>
    %c4 = arith.constant 4 : index
    %32 = memref.load %arg0[%c4] : memref<12xf32, #tpu.memory_space<smem>>
    %33 = vector.broadcast %32 : f32 to vector<4x128xf32>
    %34 = arith.select %31, %33, %29 : vector<4x128xi1>, vector<4x128xf32>
    %c1_i32_8 = arith.constant 1 : i32
    %35 = vector.broadcast %c1_i32_8 : i32 to vector<4x128xi32>
    %36 = arith.cmpi eq, %6, %35 : vector<4x128xi32>
    %c5 = arith.constant 5 : index
    %37 = memref.load %arg0[%c5] : memref<12xf32, #tpu.memory_space<smem>>
    %38 = vector.broadcast %37 : f32 to vector<4x128xf32>
    %39 = arith.select %36, %38, %34 : vector<4x128xi1>, vector<4x128xf32>
    %c2_i32_9 = arith.constant 2 : i32
    %40 = vector.broadcast %c2_i32_9 : i32 to vector<4x128xi32>
    %41 = arith.cmpi eq, %6, %40 : vector<4x128xi32>
    %c6 = arith.constant 6 : index
    %42 = memref.load %arg0[%c6] : memref<12xf32, #tpu.memory_space<smem>>
    %43 = vector.broadcast %42 : f32 to vector<4x128xf32>
    %44 = arith.select %41, %43, %39 : vector<4x128xi1>, vector<4x128xf32>
    %c3_i32_10 = arith.constant 3 : i32
    %45 = vector.broadcast %c3_i32_10 : i32 to vector<4x128xi32>
    %46 = arith.cmpi eq, %6, %45 : vector<4x128xi32>
    %c7 = arith.constant 7 : index
    %47 = memref.load %arg0[%c7] : memref<12xf32, #tpu.memory_space<smem>>
    %48 = vector.broadcast %47 : f32 to vector<4x128xf32>
    %49 = arith.select %46, %48, %44 : vector<4x128xi1>, vector<4x128xf32>
    %cst_11 = arith.constant 0.000000e+00 : f32
    %50 = vector.broadcast %cst_11 : f32 to vector<4x128xf32>
    %c0_i32_12 = arith.constant 0 : i32
    %51 = vector.broadcast %c0_i32_12 : i32 to vector<4x128xi32>
    %52 = arith.cmpi eq, %6, %51 : vector<4x128xi32>
    %c8 = arith.constant 8 : index
    %53 = memref.load %arg0[%c8] : memref<12xf32, #tpu.memory_space<smem>>
    %54 = vector.broadcast %53 : f32 to vector<4x128xf32>
    %55 = arith.select %52, %54, %50 : vector<4x128xi1>, vector<4x128xf32>
    %c1_i32_13 = arith.constant 1 : i32
    %56 = vector.broadcast %c1_i32_13 : i32 to vector<4x128xi32>
    %57 = arith.cmpi eq, %6, %56 : vector<4x128xi32>
    %c9 = arith.constant 9 : index
    %58 = memref.load %arg0[%c9] : memref<12xf32, #tpu.memory_space<smem>>
    %59 = vector.broadcast %58 : f32 to vector<4x128xf32>
    %60 = arith.select %57, %59, %55 : vector<4x128xi1>, vector<4x128xf32>
    %c2_i32_14 = arith.constant 2 : i32
    %61 = vector.broadcast %c2_i32_14 : i32 to vector<4x128xi32>
    %62 = arith.cmpi eq, %6, %61 : vector<4x128xi32>
    %c10 = arith.constant 10 : index
    %63 = memref.load %arg0[%c10] : memref<12xf32, #tpu.memory_space<smem>>
    %64 = vector.broadcast %63 : f32 to vector<4x128xf32>
    %65 = arith.select %62, %64, %60 : vector<4x128xi1>, vector<4x128xf32>
    %c3_i32_15 = arith.constant 3 : i32
    %66 = vector.broadcast %c3_i32_15 : i32 to vector<4x128xi32>
    %67 = arith.cmpi eq, %6, %66 : vector<4x128xi32>
    %c11 = arith.constant 11 : index
    %68 = memref.load %arg0[%c11] : memref<12xf32, #tpu.memory_space<smem>>
    %69 = vector.broadcast %68 : f32 to vector<4x128xf32>
    %70 = arith.select %67, %69, %65 : vector<4x128xi1>, vector<4x128xf32>
    %71 = vector.broadcast %0 : vector<1x128xf32> to vector<4x128xf32>
    %72 = arith.subf %71, %28 : vector<4x128xf32>
    %73 = vector.broadcast %1 : vector<1x128xf32> to vector<4x128xf32>
    %74 = arith.subf %73, %49 : vector<4x128xf32>
    %75 = arith.mulf %72, %72 : vector<4x128xf32>
    %76 = arith.mulf %74, %74 : vector<4x128xf32>
    %77 = arith.addf %75, %76 : vector<4x128xf32>
    %78 = arith.cmpf ole, %77, %70 : vector<4x128xf32>
    %79 = vector.broadcast %5 : vector<1x128xi1> to vector<4x128xi1>
    %80 = arith.andi %78, %79 : vector<4x128xi1>
    %cst_16 = arith.constant 0x7F800000 : f32
    %81 = vector.broadcast %cst_16 : f32 to vector<4x128xf32>
    %82 = arith.select %80, %77, %81 : vector<4x128xi1>, vector<4x128xf32>
    %cst_17 = arith.constant dense<0x7F800000> : vector<128xf32>
    %83 = vector.multi_reduction <minimumf>, %82, %cst_17 [0] : vector<4x128xf32> to vector<128xf32>
    %84 = vector.shape_cast %83 : vector<128xf32> to vector<1x128xf32>
    %85 = vector.broadcast %84 : vector<1x128xf32> to vector<4x128xf32>
    %86 = arith.cmpf oeq, %82, %85 : vector<4x128xf32>
    %87 = arith.andi %80, %86 : vector<4x128xi1>
    %cst_18 = arith.constant 4.000000e+00 : f32
    %88 = vector.broadcast %cst_18 : f32 to vector<4x128xf32>
    %89 = arith.select %87, %7, %88 : vector<4x128xi1>, vector<4x128xf32>
    %cst_19 = arith.constant dense<0x7F800000> : vector<128xf32>
    %90 = vector.multi_reduction <minimumf>, %89, %cst_19 [0] : vector<4x128xf32> to vector<128xf32>
    %91 = vector.shape_cast %90 : vector<128xf32> to vector<1x128xf32>
    %92 = vector.broadcast %91 : vector<1x128xf32> to vector<4x128xf32>
    %93 = arith.cmpf oeq, %7, %92 : vector<4x128xf32>
    %94 = arith.extui %93 : vector<4x128xi1> to vector<4x128xi32>
    %95 = arith.sitofp %94 : vector<4x128xi32> to vector<4x128xf32>
    %cst_20 = arith.constant 4.000000e+00 : f32
    %96 = vector.broadcast %cst_20 : f32 to vector<1x128xf32>
    %97 = arith.cmpf oge, %91, %96 : vector<1x128xf32>
    %98 = arith.andi %97, %5 : vector<1x128xi1>
    %99 = arith.extui %98 : vector<1x128xi1> to vector<1x128xi32>
    %100 = arith.sitofp %99 : vector<1x128xi32> to vector<1x128xf32>
    %cst_21 = arith.constant 1.562500e-02 : f32
    %101 = vector.broadcast %cst_21 : f32 to vector<1x128xf32>
    %102 = arith.mulf %0, %101 : vector<1x128xf32>
    %cst_22 = arith.constant 0.000000e+00 : f32
    %cst_23 = arith.constant 1.000000e+00 : f32
    %103 = vector.broadcast %cst_22 : f32 to vector<1x128xf32>
    %104 = arith.maximumf %103, %102 : vector<1x128xf32>
    %105 = vector.broadcast %cst_23 : f32 to vector<1x128xf32>
    %106 = arith.minimumf %105, %104 : vector<1x128xf32>
    %cst_24 = arith.constant 1.562500e-02 : f32
    %107 = vector.broadcast %cst_24 : f32 to vector<1x128xf32>
    %108 = arith.mulf %1, %107 : vector<1x128xf32>
    %cst_25 = arith.constant 0.000000e+00 : f32
    %cst_26 = arith.constant 1.000000e+00 : f32
    %109 = vector.broadcast %cst_25 : f32 to vector<1x128xf32>
    %110 = arith.maximumf %109, %108 : vector<1x128xf32>
    %111 = vector.broadcast %cst_26 : f32 to vector<1x128xf32>
    %112 = arith.minimumf %111, %110 : vector<1x128xf32>
    %cst_27 = arith.constant 1.562500e-02 : f32
    %113 = vector.broadcast %cst_27 : f32 to vector<4x128xf32>
    %114 = arith.mulf %28, %113 : vector<4x128xf32>
    %cst_28 = arith.constant 0.000000e+00 : f32
    %cst_29 = arith.constant 1.000000e+00 : f32
    %115 = vector.broadcast %cst_28 : f32 to vector<4x128xf32>
    %116 = arith.maximumf %115, %114 : vector<4x128xf32>
    %117 = vector.broadcast %cst_29 : f32 to vector<4x128xf32>
    %118 = arith.minimumf %117, %116 : vector<4x128xf32>
    %cst_30 = arith.constant 1.562500e-02 : f32
    %119 = vector.broadcast %cst_30 : f32 to vector<4x128xf32>
    %120 = arith.mulf %49, %119 : vector<4x128xf32>
    %cst_31 = arith.constant 0.000000e+00 : f32
    %cst_32 = arith.constant 1.000000e+00 : f32
    %121 = vector.broadcast %cst_31 : f32 to vector<4x128xf32>
    %122 = arith.maximumf %121, %120 : vector<4x128xf32>
    %123 = vector.broadcast %cst_32 : f32 to vector<4x128xf32>
    %124 = arith.minimumf %123, %122 : vector<4x128xf32>
    %125 = vector.broadcast %106 : vector<1x128xf32> to vector<4x128xf32>
    %126 = arith.subf %125, %118 : vector<4x128xf32>
    %127 = vector.broadcast %112 : vector<1x128xf32> to vector<4x128xf32>
    %128 = arith.subf %127, %124 : vector<4x128xf32>
    %129 = arith.mulf %126, %126 : vector<4x128xf32>
    %130 = arith.mulf %128, %128 : vector<4x128xf32>
    %131 = arith.addf %129, %130 : vector<4x128xf32>
    %cst_33 = arith.constant dense<0xFF800000> : vector<128xf32>
    %132 = vector.multi_reduction <maximumf>, %2, %cst_33 [0] : vector<5x128xf32> to vector<128xf32>
    %133 = vector.shape_cast %132 : vector<128xf32> to vector<1x128xf32>
    %134 = vector.broadcast %133 : vector<1x128xf32> to vector<5x128xf32>
    %135 = arith.subf %2, %134 : vector<5x128xf32>
    %136 = math.exp %135 : vector<5x128xf32>
    %cst_34 = arith.constant dense<0.000000e+00> : vector<128xf32>
    %137 = vector.multi_reduction <add>, %136, %cst_34 [0] : vector<5x128xf32> to vector<128xf32>
    %138 = vector.shape_cast %137 : vector<128xf32> to vector<1x128xf32>
    %139 = math.log %138 : vector<1x128xf32>
    %140 = arith.addf %133, %139 : vector<1x128xf32>
    %141 = vector.extract_strided_slice %2 {offsets = [0, 0], sizes = [4, 128], strides = [1, 1]} : vector<5x128xf32> to vector<4x128xf32>
    %142 = vector.broadcast %140 : vector<1x128xf32> to vector<4x128xf32>
    %143 = arith.subf %142, %141 : vector<4x128xf32>
    %144 = vector.extract_strided_slice %2 {offsets = [4, 0], sizes = [1, 128], strides = [1, 1]} : vector<5x128xf32> to vector<1x128xf32>
    %145 = arith.subf %140, %144 : vector<1x128xf32>
    %146 = arith.mulf %131, %95 : vector<4x128xf32>
    %147 = tpu.concatenate %95, %146 in 0 : vector<4x128xf32>, vector<4x128xf32> -> vector<8x128xf32>
    %cst_35 = arith.constant dense<0.000000e+00> : vector<8xf32>
    %148 = vector.multi_reduction <add>, %147, %cst_35 [1] : vector<8x128xf32> to vector<8xf32>
    %149 = vector.shape_cast %148 : vector<8xf32> to vector<8x1xf32>
    %150 = arith.mulf %143, %95 : vector<4x128xf32>
    %151 = tpu.concatenate %150, %100 in 0 : vector<4x128xf32>, vector<1x128xf32> -> vector<5x128xf32>
    %cst_36 = arith.constant dense<0.000000e+00> : vector<5xf32>
    %152 = vector.multi_reduction <add>, %151, %cst_36 [1] : vector<5x128xf32> to vector<5xf32>
    %153 = vector.shape_cast %152 : vector<5xf32> to vector<5x1xf32>
    %154 = vector.extract_strided_slice %149 {offsets = [0, 0], sizes = [4, 1], strides = [1, 1]} : vector<8x1xf32> to vector<4x1xf32>
    %155 = vector.extract_strided_slice %149 {offsets = [4, 0], sizes = [4, 1], strides = [1, 1]} : vector<8x1xf32> to vector<4x1xf32>
    %156 = vector.extract_strided_slice %153 {offsets = [0, 0], sizes = [4, 1], strides = [1, 1]} : vector<5x1xf32> to vector<4x1xf32>
    %157 = vector.extract_strided_slice %153 {offsets = [4, 0], sizes = [1, 1], strides = [1, 1]} : vector<5x1xf32> to vector<1x1xf32>
    %cst_37 = arith.constant 0.000000e+00 : f32
    %158 = vector.broadcast %cst_37 : f32 to vector<4x1xf32>
    %159 = arith.cmpf ogt, %154, %158 : vector<4x1xf32>
    %cst_38 = arith.constant 2.000000e+00 : f32
    %160 = vector.broadcast %cst_38 : f32 to vector<4x1xf32>
    %161 = arith.mulf %160, %154 : vector<4x1xf32>
    %cst_39 = arith.constant 1.000000e+00 : f32
    %162 = vector.broadcast %cst_39 : f32 to vector<4x1xf32>
    %163 = arith.maximumf %161, %162 : vector<4x1xf32>
    %164 = arith.divf %155, %163 : vector<4x1xf32>
    %cst_40 = arith.constant 0.000000e+00 : f32
    %165 = vector.broadcast %cst_40 : f32 to vector<4x1xf32>
    %166 = arith.select %159, %164, %165 : vector<4x1xi1>, vector<4x1xf32>
    %cst_41 = arith.constant 1.000000e+00 : f32
    %167 = vector.broadcast %cst_41 : f32 to vector<4x1xf32>
    %168 = arith.maximumf %154, %167 : vector<4x1xf32>
    %169 = arith.divf %156, %168 : vector<4x1xf32>
    %cst_42 = arith.constant 0.000000e+00 : f32
    %170 = vector.broadcast %cst_42 : f32 to vector<4x1xf32>
    %171 = arith.select %159, %169, %170 : vector<4x1xi1>, vector<4x1xf32>
    %cst_43 = arith.constant dense<0.000000e+00> : vector<1xf32>
    %172 = vector.multi_reduction <add>, %166, %cst_43 [0] : vector<4x1xf32> to vector<1xf32>
    %173 = vector.shape_cast %172 : vector<1xf32> to vector<1x1xf32>
    %cst_44 = arith.constant dense<0.000000e+00> : vector<1xf32>
    %174 = vector.multi_reduction <add>, %171, %cst_44 [0] : vector<4x1xf32> to vector<1xf32>
    %175 = vector.shape_cast %174 : vector<1xf32> to vector<1x1xf32>
    %cst_45 = arith.constant dense<0.000000e+00> : vector<1xf32>
    %176 = vector.multi_reduction <add>, %154, %cst_45 [0] : vector<4x1xf32> to vector<1xf32>
    %177 = vector.shape_cast %176 : vector<1xf32> to vector<1x1xf32>
    %cst_46 = arith.constant 3.000000e+00 : f32
    %178 = vector.broadcast %cst_46 : f32 to vector<1x1xf32>
    %179 = arith.mulf %177, %178 : vector<1x1xf32>
    %180 = math.floor %179 : vector<1x1xf32>
    %181 = tpu.iota {dimensions = array<i32: 0>} : vector<128x128xi32>
    %182 = tpu.iota {dimensions = array<i32: 1>} : vector<128x128xi32>
    %183 = arith.cmpi sle, %181, %182 : vector<128x128xi32>
    %184 = arith.extui %183 : vector<128x128xi1> to vector<128x128xi32>
    %185 = arith.sitofp %184 : vector<128x128xi32> to vector<128x128xf32>
    %186 = arith.truncf %185 : vector<128x128xf32> to vector<128x128xbf16>
    %187 = arith.truncf %100 : vector<1x128xf32> to vector<1x128xbf16>
    %cst_47 = arith.constant dense<0.000000e+00> : vector<1x128xf32>
    %188 = tpu.matmul %187, %186, %cst_47 {dimension_numbers = #tpu.dot_dimension_numbers<[1], [0], [0], [1], [0, 0, 1, 1], [], []>} : vector<1x128xbf16>, vector<128x128xbf16>, vector<1x128xf32> -> vector<1x128xf32>
    %189 = arith.cmpf ogt, %157, %180 : vector<1x1xf32>
    %190 = vector.broadcast %180 : vector<1x1xf32> to vector<1x128xf32>
    %191 = arith.cmpf ole, %188, %190 : vector<1x128xf32>
    %cst_48 = arith.constant dense<true> : vector<1x1xi1>
    %192 = arith.xori %189, %cst_48 : vector<1x1xi1>
    %193 = vector.broadcast %192 : vector<1x1xi1> to vector<1x128xi1>
    %194 = arith.ori %191, %193 : vector<1x128xi1>
    %195 = arith.andi %98, %194 : vector<1x128xi1>
    %196 = arith.extui %195 : vector<1x128xi1> to vector<1x128xi32>
    %197 = arith.sitofp %196 : vector<1x128xi32> to vector<1x128xf32>
    %198 = arith.mulf %145, %197 : vector<1x128xf32>
    %199 = tpu.concatenate %197, %198 in 0 : vector<1x128xf32>, vector<1x128xf32> -> vector<2x128xf32>
    %cst_49 = arith.constant dense<0.000000e+00> : vector<2xf32>
    %200 = vector.multi_reduction <add>, %199, %cst_49 [1] : vector<2x128xf32> to vector<2xf32>
    %201 = vector.shape_cast %200 : vector<2xf32> to vector<2x1xf32>
    %202 = vector.extract_strided_slice %201 {offsets = [0, 0], sizes = [1, 1], strides = [1, 1]} : vector<2x1xf32> to vector<1x1xf32>
    %203 = vector.extract_strided_slice %201 {offsets = [1, 0], sizes = [1, 1], strides = [1, 1]} : vector<2x1xf32> to vector<1x1xf32>
    %cst_50 = arith.constant 0.000000e+00 : f32
    %204 = vector.broadcast %cst_50 : f32 to vector<1x1xf32>
    %205 = arith.cmpf ogt, %202, %204 : vector<1x1xf32>
    %cst_51 = arith.constant 1.000000e+00 : f32
    %206 = vector.broadcast %cst_51 : f32 to vector<1x1xf32>
    %207 = arith.maximumf %202, %206 : vector<1x1xf32>
    %208 = arith.divf %203, %207 : vector<1x1xf32>
    %cst_52 = arith.constant 0.000000e+00 : f32
    %209 = vector.broadcast %cst_52 : f32 to vector<1x1xf32>
    %210 = arith.select %205, %208, %209 : vector<1x1xi1>, vector<1x1xf32>
    %211 = arith.addf %175, %210 : vector<1x1xf32>
    %cst_53 = arith.constant 1.000000e+00 : f32
    %212 = vector.broadcast %cst_53 : f32 to vector<1x1xf32>
    %213 = arith.mulf %212, %173 : vector<1x1xf32>
    %cst_54 = arith.constant 1.000000e+00 : f32
    %214 = vector.broadcast %cst_54 : f32 to vector<1x1xf32>
    %215 = arith.mulf %214, %211 : vector<1x1xf32>
    %216 = arith.addf %213, %215 : vector<1x1xf32>
    %217 = tpu.iota {dimensions = array<i32: 1>} : vector<1x128xi32>
    %c0_i32_55 = arith.constant 0 : i32
    %218 = vector.broadcast %c0_i32_55 : i32 to vector<1x128xi32>
    %219 = arith.cmpi eq, %217, %218 : vector<1x128xi32>
    %cst_56 = arith.constant 0.000000e+00 : f32
    %220 = vector.shape_cast %173 : vector<1x1xf32> to vector<1x1xf32>
    %221 = vector.broadcast %220 : vector<1x1xf32> to vector<1x128xf32>
    %222 = vector.broadcast %cst_56 : f32 to vector<1x128xf32>
    %223 = arith.select %219, %221, %222 : vector<1x128xi1>, vector<1x128xf32>
    %c1_i32_57 = arith.constant 1 : i32
    %224 = vector.broadcast %c1_i32_57 : i32 to vector<1x128xi32>
    %225 = arith.cmpi eq, %217, %224 : vector<1x128xi32>
    %cst_58 = arith.constant 0.000000e+00 : f32
    %226 = vector.shape_cast %211 : vector<1x1xf32> to vector<1x1xf32>
    %227 = vector.broadcast %226 : vector<1x1xf32> to vector<1x128xf32>
    %228 = vector.broadcast %cst_58 : f32 to vector<1x128xf32>
    %229 = arith.select %225, %227, %228 : vector<1x128xi1>, vector<1x128xf32>
    %230 = arith.addf %223, %229 : vector<1x128xf32>
    %c2_i32_59 = arith.constant 2 : i32
    %231 = vector.broadcast %c2_i32_59 : i32 to vector<1x128xi32>
    %232 = arith.cmpi eq, %217, %231 : vector<1x128xi32>
    %cst_60 = arith.constant 0.000000e+00 : f32
    %233 = vector.shape_cast %216 : vector<1x1xf32> to vector<1x1xf32>
    %234 = vector.broadcast %233 : vector<1x1xf32> to vector<1x128xf32>
    %235 = vector.broadcast %cst_60 : f32 to vector<1x128xf32>
    %236 = arith.select %232, %234, %235 : vector<1x128xi1>, vector<1x128xf32>
    %237 = arith.addf %230, %236 : vector<1x128xf32>
    %c0_61 = arith.constant 0 : index
    %c0_62 = arith.constant 0 : index
    %238 = vector.load %arg3[%c0_61, %c0_62] : memref<1x128xf32, #tpu.memory_space<vmem>>, vector<1x128xf32>
    tpu.vector_store %arg3[%c0_61, %c0_62], %237 {strides = array<i32>} : memref<1x128xf32, #tpu.memory_space<vmem>>, vector<1x128xf32>,
    return
  }
}

</mosaic_0001>

<bundles_post_ra>
// kernel: multi_task_loss.1
= control target key start
LH: loop header
LB: loop body
LE: loop exit
PB: predicated region body
PF: predicated region fallthrough
CT: control target
= control target key end

     0   :  { %8 = vsyncpa [#allocation3], 0  ;;  %s726_s0 = inlined_call_operand.vmem [shape: f32[12], index: 0, kind: input, shape index: {}]   ;;  %s727_s1 = inlined_call_operand.vmem [shape: f32[2,128], index: 1, kind: input, shape index: {}]   ;;  %s728_s2 = inlined_call_operand.vmem [shape: f32[5,128], index: 2, kind: input, shape index: {}]   ;;  %s729_s3 = inlined_call_operand.vmem [shape: f32[1,128], index: 3, kind: output, shape index: {}]  }
   0x1   :  { %s15_s14 = sshll.u32 %s726_s0, 4  ;;  %s16_s14 = int_to_ptr.vmem [resolvable:$true] %s15_s14 }
   0x2   :  { %s493_s15 = scalar_lea.vmem %s16_s14, 16  ;;  %p498_p1 = scmp.lt.s32.totalorder %s16_s14, %s16_s14 }
   0x3   :  { %p494_p0 = scmp.ne.s32.totalorder %s16_s14, %s493_s15  ;;  %p499_p2 = scmp.lt.s32.totalorder %s493_s15, %s493_s15 }
   0x5   :  { %p500_p3 = por %p499_p2, %p498_p1 }
   0x7   :  { %p501_p4 = pnand %p500_p3, %p494_p0 }
   0x9   :  { %504 = shalt.err (!%p501_p4)
}
   0xa   :  { %s507_s16 = smov [#allocation2]  }
   0xb   :  { %18 = dma.vmem_to_smem %s16_s14, 16, %s507_s16, [#allocation3]  }
   0xc   :  { %505 = dma.done.wait [#allocation3], 16  }
   0xd   :  { %506 = vsyncadd [#allocation3], 4294967280 }
   0xe   :  { %26 = sfence }
   0xf   :  { %v31_v0 = vlaneseq  ;;  %v508_v1 = vmov 0.0   ;;  %vm509_vm0 = vmmov 0   ;;  %s547_s0 = sld [smem:[#allocation2]]  ;;  %s550_s17 = sld [smem:[#allocation2 + $0x1]]  ;;  %v510_v11 = vmov 1.0|1.0  }
  0x10   :  { %455 = vmatprep.subr.bf16.mxu0 %v508_v1  ;;  %471 = vmatprep.mubr.msk.bf16.mxu0 %vm509_vm0, %v508_v1  ;;  %s552_s18 = sld [smem:[#allocation2 + $0x2]]  ;;  %s558_s19 = sld [smem:[#allocation2 + $0x3]]  ;;  %v28_v30 = vld [vmem:[%s727_s1] sm:$0x1]  ;;  %v29_v31 = vld [vmem:[%s727_s1 + $0x1] sm:$0x1] }
  0x11   :  { %v538_v2 = vand.u32 127, %v31_v0  ;;  %v540_v3 = vshrl.u32 %v31_v0, 7  ;;  %s560_s20 = sld [smem:[#allocation2 + $0x4]]  ;;  %s564_s21 = sld [smem:[#allocation2 + $0x5]]  ;;  %v647_v40 = vld [vmem:[%s728_s2] sm:$0x1f] }
  0x12   :  { %s566_s22 = sld [smem:[#allocation2 + $0x6]]  ;;  %s569_s23 = sld [smem:[#allocation2 + $0x7]] }
  0x13   :  { %v219_v4 = vadd.s32 8, %v540_v3  ;;  %vm234_vm1 = vcmp.le.s32.totalorder %v540_v3, %v538_v2  ;;  %v220_v5 = vadd.s32 16, %v540_v3  ;;  %v221_v6 = vadd.s32 24, %v540_v3  ;;  %s571_s24 = sld [smem:[#allocation2 + $0x8]]  ;;  %s576_s25 = sld [smem:[#allocation2 + $0x9]] }
  0x14   :  { %v222_v7 = vadd.s32 32, %v540_v3  ;;  %v223_v8 = vadd.s32 40, %v540_v3  ;;  %v224_v9 = vadd.s32 48, %v540_v3  ;;  %v225_v10 = vadd.s32 56, %v540_v3  ;;  %s583_s26 = sld [smem:[#allocation2 + $0xa]]  ;;  %s596_s27 = sld [smem:[#allocation2 + $0xb]] }
  0x15   :  { %vm235_vm2 = vcmp.le.s32.totalorder %v219_v4, %v538_v2  ;;  %vm236_vm3 = vcmp.le.s32.totalorder %v220_v5, %v538_v2  ;;  %vm237_vm4 = vcmp.le.s32.totalorder %v221_v6, %v538_v2  ;;  %v226_v12 = vadd.s32 64, %v540_v3 }
  0x16   :  { %vm427_vm5 = vmpackc.low %vm235_vm2, %vm234_vm1  ;;  %vm238_vm7 = vcmp.le.s32.totalorder %v222_v7, %v538_v2  ;;  %vm239_vm8 = vcmp.le.s32.totalorder %v223_v8, %v538_v2  ;;  %vm240_vm9 = vcmp.le.s32.totalorder %v224_v9, %v538_v2  ;;  %vm241_vm10 = vcmp.le.s32.totalorder %v225_v10, %v538_v2 }
  0x17   :  { %456 = vmatpush3.bf16.msk.msra.mxu0 %vm427_vm5, %v510_v11  ;;  %vm429_vm6 = vmpackc.low %vm237_vm4, %vm236_vm3  ;;  %v227_v13 = vadd.s32 72, %v540_v3  ;;  %vm37_vm11 = vcmp.eq.s32.totalorder %v540_v3, 0  ;;  %v39_v14 = vstv %s547_s0  ;;  %vm41_vm12 = vcmp.eq.s32.totalorder %v540_v3, 1 }
  0x18   :  { %457 = vmatprep.subr.bf16.mxu0 %v508_v1  ;;  %vm431_vm13 = vmpackc.low %vm239_vm8, %vm238_vm7  ;;  %v40_v15 = vsel %vm37_vm11, %v39_v14, 0.0  ;;  %v43_v16 = vstv %s550_s17  ;;  %vm45_vm14 = vcmp.eq.s32.totalorder %v540_v3, 2  ;;  %v47_v17 = vstv %s552_s18 }
  0x19   :  { %v228_v18 = vadd.s32 80, %v540_v3  ;;  %v44_v19 = vsel %vm41_vm12, %v43_v16, %v40_v15  ;;  %vm49_vm15 = vcmp.eq.s32.totalorder %v540_v3, 3  ;;  %v54_v20 = vstv %s560_s20  ;;  %vm433_vm0 = vmpackc.low %vm241_vm10, %vm240_vm9 }
  0x1a   :  { %v51_v21 = vstv %s558_s19  ;;  %v55_v22 = vsel %vm37_vm11, %v54_v20, 0.0  ;;  %v57_v23 = vstv %s564_s21  ;;  %v60_v24 = vstv %s566_s22 }
  0x1b   :  { %458 = vmatpush3.bf16.msk.msra.mxu0 %vm429_vm6, %v510_v11  ;;  %v48_v25 = vsel %vm45_vm14, %v47_v17, %v44_v19  ;;  %v58_v26 = vsel %vm41_vm12, %v57_v23, %v55_v22  ;;  %v63_v27 = vstv %s569_s23  ;;  %v66_v28 = vstv %s571_s24 }
  0x1c   :  { %459 = vmatprep.subr.bf16.mxu0 %v508_v1  ;;  %v229_v29 = vadd.s32 88, %v540_v3  ;;  %v61_v32 = vsel %vm45_vm14, %v60_v24, %v58_v26  ;;  %v67_v33 = vsel %vm37_vm11, %v66_v28, 0.0  ;;  %v69_v34 = vstv %s576_s25 }
  0x1d   :  { %vm242_vm1 = vcmp.le.s32.totalorder %v226_v12, %v538_v2  ;;  %vm243_vm2 = vcmp.le.s32.totalorder %v227_v13, %v538_v2  ;;  %v635_v35 = vsub.s32 0, %v540_v3  ;;  %v52_v36 = vsel %vm49_vm15, %v51_v21, %v48_v25 }
  0x1e   :  { %v64_v37 = vsel %vm49_vm15, %v63_v27, %v61_v32  ;;  %v70_v38 = vsel %vm41_vm12, %v69_v34, %v67_v33  ;;  %v72_v39 = vstv %s583_s26  ;;  %v230_v41 = vadd.s32 96, %v540_v3  ;;  %vm435_vm3 = vmpackc.low %vm243_vm2, %vm242_vm1 }
  0x1f   :  { %460 = vmatpush3.bf16.msk.msra.mxu0 %vm431_vm13, %v510_v11  ;;  %v231_v42 = vadd.s32 104, %v540_v3  ;;  %v80_v43 = vrot.slane %v28_v30, %v635_v35  ;;  %v85_v44 = vrot.slane %v29_v31, %v635_v35  ;;  %vm244_vm4 = vcmp.le.s32.totalorder %v228_v18, %v538_v2 }
  0x20   :  { %461 = vmatprep.subr.bf16.mxu0 %v508_v1  ;;  %vm245_vm5 = vcmp.le.s32.totalorder %v229_v29, %v538_v2  ;;  %v75_v45 = vstv %s596_s27  ;;  %vm145_vm6 = vcmask 1044480   ;;  %v73_v46 = vsel %vm45_vm14, %v72_v39, %v70_v38 }
  0x21   :  { %v81_v47 = vsub.f32 %v80_v43, %v52_v36  ;;  %v86_v48 = vsub.f32 %v85_v44, %v64_v37  ;;  %v146_v49 = vsel %vm145_vm6, %v647_v40, -inf  ;;  %vm437_vm7 = vmpackc.low %vm245_vm5, %vm244_vm4  ;;  %vm246_vm8 = vcmp.le.s32.totalorder %v230_v41, %v538_v2 }
  0x22   :  { %v147_v50 = vrot.slane %v146_v49, 4  ;;  %vm247_vm9 = vcmp.le.s32.totalorder %v231_v42, %v538_v2  ;;  %v76_v53 = vsel %vm49_vm15, %v75_v45, %v73_v46  ;;  %v232_v55 = vadd.s32 112, %v540_v3 }
  0x23   :  { %462 = vmatpush3.bf16.msk.msra.mxu0 %vm433_vm0, %v510_v11  ;;  %v87_v51 = vmul.f32 %v81_v47, %v81_v47  ;;  %v88_v52 = vmul.f32 %v86_v48, %v86_v48  ;;  %v233_v56 = vadd.s32 120, %v540_v3  ;;  %vm33_vm10 = vcmp.lt.s32.totalorder %v538_v2, 64  ;;  %vm439_vm11 = vmpackc.low %vm247_vm9, %vm246_vm8 }
  0x24   :  { %463 = vmatprep.subr.bf16.mxu0 %v508_v1  ;;  %v148_v54 = vmax.f32 %v146_v49, %v147_v50  ;;  %vm95_vm13 = vcmask 1043456   ;;  %vm248_vm15 = vcmp.le.s32.totalorder %v232_v55, %v538_v2  ;;  %v120_v6 = vmul.f32 0.015625, %v28_v30 }
  0x25   :  { %v89_v57 = vadd.f32 %v88_v52, %v87_v51  ;;  %vm249_vm0 = vcmp.le.s32.totalorder %v233_v56, %v538_v2  ;;  %v123_v7 = vmul.f32 0.015625, %v29_v31  ;;  %v126_v10 = vmul.f32 0.015625, %v52_v36 }
  0x26   :  { %v149_v58 = vrot.slane %v148_v54, 2  ;;  %vm441_vm1 = vmpackc.low %vm249_vm0, %vm248_vm15  ;;  %v121_v14 = vmax.f32 %v120_v6, 0.0  ;;  %v129_v16 = vmul.f32 0.015625, %v64_v37  ;;  %v36_v18 = vcvt.s32.f32 %v540_v3 }
  0x27   :  { %464 = vmatpush3.bf16.msk.msra.mxu0 %vm435_vm3, %v510_v11  ;;  %vm90_vm12 = vcmp.le.f32.partialorder %v89_v57, %v76_v53  ;;  %v124_v15 = vmax.f32 %v123_v7, 0.0  ;;  %v127_v19 = vmax.f32 %v126_v10, 0.0  ;;  %vm195_vm15 = vcmask 3072  }
  0x28   :  { %465 = vmatprep.subr.bf16.mxu0 %v508_v1  ;;  %vm675_vm14 = vmand %vm90_vm12, %vm33_vm10  ;;  %v150_v60 = vmax.f32 %v148_v54, %v149_v58  ;;  %v122_v21 = vmin.f32 %v121_v14, 1.0  ;;  %v130_v23 = vmax.f32 %v129_v16, 0.0 }
  0x29   :  { %v94_v61 = vsel %vm675_vm14, %v89_v57, inf  ;;  %v125_v22 = vmin.f32 %v124_v15, 1.0  ;;  %v128_v24 = vmin.f32 %v127_v19, 1.0 }
  0x2a   :  { %v96_v62 = vsel %vm95_vm13, %v94_v61, inf  ;;  %v151_v63 = vrot.slane %v150_v60, 1  ;;  %v131_v26 = vmin.f32 %v130_v23, 1.0  ;;  %v135_v27 = vrot.slane %v122_v21, %v635_v35 }
  0x2b   :  { %466 = vmatpush3.bf16.msk.msra.mxu0 %vm437_vm7, %v510_v11  ;;  %v97_v0 = vrot.slane %v96_v62, 4  ;;  %v140_v28 = vrot.slane %v125_v22, %v635_v35 }
  0x2c   :  { %467 = vmatprep.subr.bf16.mxu0 %v508_v1  ;;  %v152_v4 = vmax.f32 %v150_v60, %v151_v63  ;;  %v136_v32 = vsub.f32 %v135_v27, %v128_v24 }
  0x2d   :  { %v98_v5 = vmin.f32 %v96_v62, %v97_v0  ;;  %v141_v33 = vsub.f32 %v140_v28, %v131_v26 }
  0x2e   :  { %v153_v8 = vsub.f32 %v647_v40, %v152_v4  ;;  %v142_v41 = vmul.f32 %v136_v32, %v136_v32 }
  0x2f   :  { %468 = vmatpush3.bf16.msk.msra.mxu0 %vm439_vm11, %v510_v11  ;;  %v99_v9 = vrot.slane %v98_v5, 2  ;;  %v143_v42 = vmul.f32 %v141_v33, %v141_v33 }
  0x30   :  { %469 = vmatprep.subr.bf16.mxu0 %v508_v1  ;;  %v154_v12 = vmul.f32 1.442695, %v153_v8 }
  0x31   :  { %v100_v13 = vmin.f32 %v98_v5, %v99_v9  ;;  %v144_v35 = vadd.f32 %v143_v42, %v142_v41 }
  0x32   :  { %483 = vpow2.f32 %v154_v12 }
  0x33   :  { %470 = vmatpush3.bf16.msk.msra.mxu0 %vm441_vm1, %v510_v11  ;;  %v101_v17 = vrot.slane %v100_v13, 1 }
  0x35   :  { %v102_v20 = vmin.f32 %v100_v13, %v101_v17 }
  0x37   :  { %vm103_vm2 = vcmp.eq.f32.partialorder %v94_v61, %v102_v20 }
  0x38   :  { %vm104_vm3 = vmand %vm675_vm14, %vm103_vm2  ;;  %vm350_vm2 = vcmask 1040384  }
  0x39   :  { %v105_v25 = vsel %vm104_vm3, %v36_v18, 4.0  ;;  %vm352_vm3 = vcmask 1041408  }
  0x3a   :  { %v106_v29 = vsel %vm95_vm13, %v105_v25, inf }
  0x3b   :  { %v107_v30 = vrot.slane %v106_v29, 4 }
  0x3c   :  { %v484_v3 = vpop.eup %483 }
  0x3d   :  { %v108_v31 = vmin.f32 %v106_v29, %v107_v30  ;;  %v156_v34 = vsel %vm145_vm6, %v484_v3, 0.0 }
  0x3e   :  { %v157_v36 = vrot.slane %v156_v34, 4 }
  0x3f   :  { %v109_v37 = vrot.slane %v108_v31, 2 }
  0x40   :  { %v158_v38 = vadd.f32 %v157_v36, %v156_v34 }
  0x41   :  { %v110_v39 = vmin.f32 %v108_v31, %v109_v37 }
  0x42   :  { %v159_v43 = vrot.slane %v158_v38, 2 }
  0x43   :  { %v111_v44 = vrot.slane %v110_v39, 1 }
  0x44   :  { %v160_v45 = vadd.f32 %v159_v43, %v158_v38 }
  0x45   :  { %v112_v46 = vmin.f32 %v110_v39, %v111_v44 }
  0x46   :  { %v161_v47 = vrot.slane %v160_v45, 1 }
  0x47   :  { %vm116_vm4 = vcmp.ge.f32.partialorder %v112_v46, 4.0  ;;  %vm113_vm5 = vcmp.eq.f32.partialorder %v36_v18, %v112_v46 }
  0x48   :  { %vm697_vm7 = vmand %vm116_vm4, %vm33_vm10  ;;  %v409_v49 = vsel %vm113_vm5, 1.0, %v508_v1  ;;  %v162_v50 = vadd.f32 %v161_v47, %v160_v45  ;;  %vm512_vm10 = vmmov 1   ;;  %vm376_vm5 = vcmp.eq.s32.totalorder %v538_v2, 1 }
  0x49   :  { %vm443_vm8 = vmpackc.low %vm697_vm7, %vm697_vm7  ;;  %v167_v51 = vmul.f32 %v409_v49, %v144_v35  ;;  %v410_v58 = vsel %vm697_vm7, 1.0, %v508_v1 }
  0x4a   :  { %472 = vmatmul.mubr.msk.bf16.vlgmr.msra.gmra.mrb[0].mxu0 %vm443_vm8, %v510_v11  ;;  %485 = vlog2.f32 %v162_v50  ;;  %v511_v11 = vmov 0  }
  0x4b   :  { %v169_v52 = vrot.slane %v167_v51, 4  ;;  %481 = vset.pattern.permute.xlu1 %v511_v11  ;;  %482 = vset.pattern.permute.xlu0 %v511_v11 }
  0x4d   :  { %v171_v53 = vsel %vm95_vm13, %v409_v49, %v169_v52 }
  0x4e   :  { %172 = vadd.xlane.f32.xlu0 %v171_v53 }
  0x54   :  { %v486_v54 = vpop.eup %485 }
  0x55   :  { %v164_v55 = vmul.f32 0.6931472, %v486_v54 }
  0x57   :  { %v165_v56 = vadd.f32 %v164_v55, %v152_v4 }
  0x59   :  { %v166_v57 = vsub.f32 %v165_v56, %v647_v40 }
  0x5b   :  { %v174_v59 = vmul.f32 %v409_v49, %v166_v57 }
  0x5d   :  { %v175_v60 = vsel %vm95_vm13, %v174_v59, %v410_v58 }
  0x5e   :  { %v176_v61 = vsel %vm145_vm6, %v175_v60, 0.0 }
  0x5f   :  { %177 = vadd.xlane.f32.xlu0 %v176_v61 }
  0xdb   :  { %v173_v62 = vpop.xlane.xlu0 %172 }
  0xdc   :  { %v191_v63 = vmax.f32 %v173_v62, 1.0  ;;  %vm179_vm9 = vcmp.gt.f32.partialorder %v173_v62, 0.0  ;;  %v210_v5 = vsel %vm95_vm13, %v173_v62, 0.0  ;;  %v180_v12 = vmul.f32 2.0, %v173_v62 }
  0xdd   :  { %v211_v7 = vrot.slane %v210_v5, 4 }
  0xde   :  { %487 = vrcp.f32 %v191_v63  ;;  %v181_v14 = vmax.f32 %v180_v12, 1.0 }
  0xdf   :  { %v212_v8 = vadd.f32 %v211_v7, %v210_v5 }
  0xe0   :  { %v183_v16 = vrot.slane %v181_v14, 4 }
  0xe1   :  { %v213_v9 = vrot.slane %v212_v8, 2 }
  0xe2   :  { %489 = vrcp.f32 %v183_v16 }
  0xe3   :  { %v214_v10 = vadd.f32 %v213_v9, %v212_v8 }
  0xe5   :  { %v215_v13 = vrot.slane %v214_v10, 1 }
  0xe7   :  { %v216_v15 = vadd.f32 %v215_v13, %v214_v10 }
  0xe8   :  { %v488_v0 = vpop.eup %487 }
  0xe9   :  { %v217_v17 = vmul.f32 3.0, %v216_v15 }
  0xeb   :  { %v218_v18 = vfloor.f32 %v217_v17 }
  0xec   :  { %v178_v4 = vpop.xlane.xlu0 %177  ;;  %v490_v19 = vpop.eup %489 }
  0xed   :  { %v193_v40 = vmul.f32 %v488_v0, %v178_v4  ;;  %vm331_vm6 = vcmp.gt.f32.partialorder %v178_v4, %v218_v18  ;;  %v186_v20 = vmul.f32 %v490_v19, %v173_v62 }
  0xee   :  { %vm333_vm11 = vmxor %vm331_vm6, %vm512_vm10 }
  0xef   :  { %v194_v6 = vsel %vm179_vm9, %v193_v40, 0.0  ;;  %v336_v21 = vsel %vm333_vm11, 1, %v511_v11  ;;  %v188_v23 = vrot.slane %v186_v20, 4 }
  0xf0   :  { %v337_v22 = vrot.slane %v336_v21, 4  ;;  %v203_v43 = vsel %vm95_vm13, %v194_v6, 0.0  ;;  %vm369_vm13 = vcmp.eq.s32.totalorder %v538_v2, 0 }
  0xf1   :  { %v190_v26 = vsel %vm179_vm9, %v188_v23, 0.0  ;;  %v204_v44 = vrot.slane %v203_v43, 4 }
  0xf2   :  { %vm338_vm14 = vcmp.ne.s32.totalorder %v337_v22, 0  ;;  %v196_v30 = vsel %vm195_vm15, %v190_v26, 0.0 }
  0xf3   :  { %v197_v32 = vrot.slane %v196_v30, 4  ;;  %v205_v46 = vadd.f32 %v204_v44, %v203_v43 }
  0xf5   :  { %v198_v36 = vadd.f32 %v197_v32, %v196_v30  ;;  %v206_v47 = vrot.slane %v205_v46, 2 }
  0xf7   :  { %v199_v38 = vrot.slane %v198_v36, 2  ;;  %v207_v48 = vadd.f32 %v206_v47, %v205_v46 }
  0xf9   :  { %v200_v39 = vadd.f32 %v199_v38, %v198_v36  ;;  %v208_v50 = vrot.slane %v207_v48, 1 }
  0xfb   :  { %v201_v41 = vrot.slane %v200_v39, 1  ;;  %v209_v53 = vadd.f32 %v208_v50, %v207_v48 }
  0xfd   :  { %v202_v42 = vadd.f32 %v201_v41, %v200_v39 }
 0x11d   :  { %v325_v24 = vpop.f32.mrb[0].mxu0 }
 0x11e   :  { %vm332_vm12 = vcmp.le.f32.partialorder %v325_v24, %v218_v18  ;;  %v473_v25 = vpop.f32.mrb[1].mxu0 }
 0x11f   :  { %vm339_vm0 = vmor %vm332_vm12, %vm338_vm14  ;;  %v328_v27 = vpop.f32.mrb[2].mxu0 }
 0x120   :  { %vm340_vm1 = vmand %vm697_vm7, %vm339_vm0  ;;  %v474_v28 = vpop.f32.mrb[3].mxu0  ;;  %vm384_vm7 = vcmp.eq.s32.totalorder %v538_v2, 2 }
 0x121   :  { %v445_v29 = vsel %vm340_vm1, 1.0, %v508_v1 }
 0x122   :  { %v344_v3 = vrot.slane %v445_v29, 4 }
 0x124   :  { %v346_v31 = vmul.f32 %v344_v3, %v166_v57 }
 0x126   :  { %v348_v33 = vrot.slane %v346_v31, 3 }
 0x128   :  { %v351_v34 = vsel %vm350_vm2, %v445_v29, %v348_v33 }
 0x129   :  { %v353_v37 = vsel %vm352_vm3, %v351_v34, 0.0 }
 0x12a   :  { %354 = vadd.xlane.f32.xlu1 %v353_v37 }
 0x13b   :  { %372 = vperm.xlu1 %481, %v202_v42  }
 0x1b7   :  { %v355_v1 = vpop.xlane.xlu1 %354 }
 0x1b8   :  { %v357_v45 = vmax.f32 %v355_v1, 1.0  ;;  %vm356_vm4 = vcmp.gt.f32.partialorder %v355_v1, 0.0 }
 0x1ba   :  { %v359_v35 = vrot.slane %v357_v45, 7 }
 0x1bb   :  { %v373_v57 = vpop.permute.xlu1 %372 }
 0x1bc   :  { %491 = vrcp.f32 %v359_v35  ;;  %v375_v59 = vsel %vm369_vm13, %v373_v57, 0.0 }
 0x1c6   :  { %v492_v49 = vpop.eup %491 }
 0x1c7   :  { %v362_v51 = vmul.f32 %v492_v49, %v355_v1 }
 0x1c9   :  { %v364_v52 = vrot.slane %v362_v51, 1 }
 0x1cb   :  { %v366_v54 = vsel %vm356_vm4, %v364_v52, 0.0 }
 0x1cc   :  { %v367_v55 = vadd.f32 %v366_v54, %v209_v53 }
 0x1ce   :  { %379 = vperm.xlu0 %482, %v367_v55   ;;  %v368_v56 = vadd.f32 %v367_v55, %v202_v42 }
 0x1d0   :  { %387 = vperm.xlu1 %481, %v368_v56  }
 0x24d   :  { %v380_v58 = vpop.permute.xlu0 %379 }
 0x24e   :  { %v382_v60 = vsel %vm376_vm5, %v380_v58, 0.0 }
 0x24f   :  { %v383_v61 = vadd.f32 %v382_v60, %v375_v59  ;;  %v388_v11 = vpop.permute.xlu1 %387 }
 0x250   :  { %v390_v62 = vsel %vm384_vm7, %v388_v11, 0.0 }
 0x251   :  { %v391_v63 = vadd.f32 %v390_v62, %v383_v61 }
 0x253   :  { %392 = vst [vmem:[%s729_s3] sm:$0x1] %v391_v63 }
 0x254   :  { %397 = vsyncpa [#allocation3], 1 }

</bundles_post_ra>
